<compile_context>
chip_gen: v6e
topology: v6e:2x2x1
jax: 0.10.0
libtpu: 0.0.40
codegen_flags: <defaults>
</compile_context>

<pallas_src>
import math
import functools

import numpy as np
import jax
import jax.numpy as jnp
from jax.experimental import pallas as pl
from jax.experimental.pallas import tpu as pltpu


def _build_tables(num_channels, flip_sin_to_cos, downscale_freq_shift, scale, max_period):
    """Fused full-width frequency/phase tables (trace-time, numpy).

    out[n, c] = sin(t[n] * freqs[c] + phase[c]) reproduces
    torch.cat([sin(emb), cos(emb)], -1) (optionally flipped) plus the odd-channel
    zero pad:
      * sin lanes: phase 0
      * cos lanes: phase pi/2       (cos(x) == sin(x + pi/2))
      * odd pad lane: freq 0, phase 0 (sin(0) == 0)
    `scale` is folded into freqs.
    """
    half = num_channels // 2
    denom = float(half) - float(downscale_freq_shift)
    assert denom != 0.0, "half_dim - downscale_freq_shift must be nonzero"
    j = np.arange(half, dtype=np.float64)
    f = (np.exp(-math.log(max_period) * j / denom) * float(scale)).astype(np.float32)

    freqs = np.zeros((1, num_channels), np.float32)
    phase = np.zeros((1, num_channels), np.float32)
    half_pi = np.float32(math.pi / 2.0)
    if flip_sin_to_cos:
        # output layout: [cos half | sin half | (pad)]
        freqs[0, :half] = f
        phase[0, :half] = half_pi
        freqs[0, half:2 * half] = f          # phase 0 (sin)
    else:
        # output layout: [sin half | cos half | (pad)]
        freqs[0, :half] = f                  # phase 0 (sin)
        freqs[0, half:2 * half] = f
        phase[0, half:2 * half] = half_pi
    # odd pad lane (if any) keeps freq=0, phase=0 -> sin(0) = 0
    return jnp.asarray(freqs), jnp.asarray(phase)


def _timestep_embedding_kernel(t_ref, freqs_ref, phase_ref, out_ref):
    """One row-tile of the embedding.

    t_ref:     [tile_n, 1]            f32 timesteps
    freqs_ref: [1, num_channels]      f32 fused frequency table (grid-resident)
    phase_ref: [1, num_channels]      f32 fused phase table (grid-resident)
    out_ref:   [tile_n, num_channels] embedding (single full-width store)
    """
    emb = t_ref[...] * freqs_ref[...] + phase_ref[...]   # VPU: fused broadcast mul-add
    out_ref[...] = jnp.sin(emb).astype(out_ref.dtype)    # EUP sin, one lane-dense store


def _pick_tile(n, num_channels, tile_n, vmem_budget_bytes):
    """Rows per grid step: multiple of 8, big enough DMAs, VMEM-budgeted, >=2 steps when possible."""
    bytes_per_row = num_channels * 4
    if tile_n is None:
        # target roughly a 1 MiB output DMA per grid step
        tile_n = max(256, (1 << 20) // bytes_per_row)
    # double-buffered output tile must fit the budget (v5e scoped default 16 MiB, v7x 64 MiB phys)
    cap = max(8, vmem_budget_bytes // (2 * bytes_per_row))
    tile = max(8, (min(int(tile_n), cap) // 8) * 8)
    n_pad = ((n + 7) // 8) * 8
    if tile >= n_pad:
        if n_pad > 8:
            # keep >=2 grid steps so "parallel" megacore sharding (v7x) has work to split
            tile = max(8, -(-(n_pad // 2) // 8) * 8)
        else:
            tile = n_pad
    return tile


def timesteps_forward(timesteps, num_channels, flip_sin_to_cos=False,
                      downscale_freq_shift=1.0, scale=1.0, max_period=10000,
                      tile_n=None, out_dtype=jnp.float32,
                      vmem_budget_bytes=8 << 20, jnp_fallback_below=0):
    """JAX/Pallas equivalent of Timesteps(num_channels, ...).forward(timesteps)."""
    assert timesteps.ndim == 1, "Timesteps should be a 1d-array"
    assert num_channels >= 2, "num_channels must be >= 2"
    n = timesteps.shape[0]

    freqs, phase = _build_tables(num_channels, bool(flip_sin_to_cos),
                                 downscale_freq_shift, scale, max_period)
    t_col = timesteps.astype(jnp.float32).reshape(n, 1)

    # Optional tiny-batch fallback: for very small N the pallas_call is pure launch
    # overhead and blocks XLA fusion with neighbors. Off by default so the kernel
    # path is always exercised here.
    if n <= jnp_fallback_below:
        return jnp.sin(t_col * freqs + phase).astype(out_dtype)

    tile = _pick_tile(n, num_channels, tile_n, vmem_budget_bytes)
    grid = (pl.cdiv(n, tile),)

    out_bytes = n * num_channels * jnp.dtype(out_dtype).itemsize
    cost = pl.CostEstimate(
        flops=2 * n * num_channels,                      # broadcast mul + add
        transcendentals=n * num_channels,                # one sin per output element
        bytes_accessed=out_bytes + n * 4 + 2 * num_channels * 4,
    )

    return pl.pallas_call(
        _timestep_embedding_kernel,
        out_shape=jax.ShapeDtypeStruct((n, num_channels), out_dtype),
        grid=grid,
        in_specs=[
            pl.BlockSpec((tile, 1), lambda i: (i, 0)),            # timesteps row tile
            pl.BlockSpec((1, num_channels), lambda i: (0, 0)),    # fused freq table (resident)
            pl.BlockSpec((1, num_channels), lambda i: (0, 0)),    # fused phase table (resident)
        ],
        out_specs=pl.BlockSpec((tile, num_channels), lambda i: (i, 0)),
        compiler_params=pltpu.CompilerParams(
            dimension_semantics=("parallel",)),
        cost_estimate=cost,
    )(t_col, freqs, phase)


def _reference(timesteps, embedding_dim, flip_sin_to_cos, downscale_freq_shift,
               scale, max_period=10000):
    """Faithful port of the PyTorch get_timestep_embedding (separate sin/cos, scale after mul)."""
    half_dim = embedding_dim // 2
    exponent = -math.log(max_period) * jnp.arange(half_dim, dtype=jnp.float32)
    exponent = exponent / (half_dim - downscale_freq_shift)
    freqs = jnp.exp(exponent)
    emb = timesteps[:, None].astype(jnp.float32) * freqs[None, :]
    emb = scale * emb
    emb = jnp.concatenate([jnp.sin(emb), jnp.cos(emb)], axis=-1)
    if flip_sin_to_cos:
        emb = jnp.concatenate([emb[:, half_dim:], emb[:, :half_dim]], axis=-1)
    if embedding_dim % 2 == 1:
        emb = jnp.pad(emb, ((0, 0), (0, 1)))
    return emb


if __name__ == "__main__":
    key = jax.random.PRNGKey(0)
    TOL = 2e-3  # covers f32 rounding from cos-as-sin(x+pi/2) / scale folding at args ~2000

    # Case 1: typical diffusion config -- small batch, even dim, flipped sin/cos.
    num_channels = 64
    flip, shift, scale = True, 0.0, 1.0
    timesteps = jax.random.uniform(key, (8,), dtype=jnp.float32) * 1000.0
    out = jax.block_until_ready(
        timesteps_forward(timesteps, num_channels, flip_sin_to_cos=flip,
                          downscale_freq_shift=shift, scale=scale))
    ref = _reference(timesteps, num_channels, flip, shift, scale)
    assert out.shape == (8, num_channels), out.shape
    assert out.dtype == jnp.float32
    assert float(jnp.max(jnp.abs(out - ref))) < TOL

    # Case 2: odd num_channels (pad lane folded into the sin table) + non-unit scale, unflipped.
    out2 = jax.block_until_ready(
        timesteps_forward(timesteps, 33, flip_sin_to_cos=False,
                          downscale_freq_shift=1.0, scale=2.0))
    ref2 = _reference(timesteps, 33, False, 1.0, 2.0)
    assert out2.shape == (8, 33), out2.shape
    assert float(jnp.max(jnp.abs(out2 - ref2))) < TOL
    assert float(jnp.max(jnp.abs(out2[:, -1]))) == 0.0   # pad lane is exactly zero

    # Case 3: N not a multiple of the tile -> multi-block grid with a partial last tile.
    t3 = jax.random.uniform(jax.random.PRNGKey(1), (40,), dtype=jnp.float32) * 1000.0
    out3 = jax.block_until_ready(
        timesteps_forward(t3, num_channels, flip_sin_to_cos=flip,
                          downscale_freq_shift=shift, scale=scale, tile_n=16))
    ref3 = _reference(t3, num_channels, flip, shift, scale)
    assert out3.shape == (40, num_channels), out3.shape
    assert float(jnp.max(jnp.abs(out3 - ref3))) < TOL

    # Case 4: larger N exercises the auto tile selection (>=2 parallel grid steps).
    t4 = jax.random.uniform(jax.random.PRNGKey(2), (4096,), dtype=jnp.float32) * 1000.0
    out4 = jax.block_until_ready(
        timesteps_forward(t4, num_channels, flip_sin_to_cos=flip,
                          downscale_freq_shift=shift, scale=scale))
    ref4 = _reference(t4, num_channels, flip, shift, scale)
    assert out4.shape == (4096, num_channels), out4.shape
    assert float(jnp.max(jnp.abs(out4 - ref4))) < TOL

    print("KERNEL_OK")
</pallas_src>

<mosaic_0001>
module attributes {stable_mosaic.version = 11 : i64} {
  func.func @_timestep_embedding_kernel(%arg0: i32, %arg1: memref<8x1xf32, #tpu.memory_space<vmem>>, %arg2: memref<1x64xf32, #tpu.memory_space<vmem>>, %arg3: memref<1x64xf32, #tpu.memory_space<vmem>>, %arg4: memref<8x64xf32, #tpu.memory_space<vmem>>) attributes {dimension_semantics = [#tpu.dimension_semantics<parallel>], iteration_bounds = array<i64: 1>, scalar_prefetch = 0 : i64, scratch_operands = 0 : i64, tpu.core_type = #tpu.core_type<tc>, window_params = [{transform_indices = @transform_0, window_bounds = array<i64: 8, 1>}, {pipeline_mode = #tpu.pipeline_mode<synchronous>, transform_indices = @transform_1, window_bounds = array<i64: 1, 64>}, {pipeline_mode = #tpu.pipeline_mode<synchronous>, transform_indices = @transform_2, window_bounds = array<i64: 1, 64>}, {transform_indices = @transform_3, window_bounds = array<i64: 8, 64>}]} {
    %c0 = arith.constant 0 : index
    %c0_0 = arith.constant 0 : index
    %0 = vector.load %arg1[%c0, %c0_0] : memref<8x1xf32, #tpu.memory_space<vmem>>, vector<8x1xf32>
    %c0_1 = arith.constant 0 : index
    %c0_2 = arith.constant 0 : index
    %1 = vector.load %arg2[%c0_1, %c0_2] : memref<1x64xf32, #tpu.memory_space<vmem>>, vector<1x64xf32>
    %2 = vector.broadcast %0 : vector<8x1xf32> to vector<8x64xf32>
    %3 = vector.broadcast %1 : vector<1x64xf32> to vector<8x64xf32>
    %4 = arith.mulf %2, %3 : vector<8x64xf32>
    %c0_3 = arith.constant 0 : index
    %c0_4 = arith.constant 0 : index
    %5 = vector.load %arg3[%c0_3, %c0_4] : memref<1x64xf32, #tpu.memory_space<vmem>>, vector<1x64xf32>
    %6 = vector.broadcast %5 : vector<1x64xf32> to vector<8x64xf32>
    %7 = arith.addf %4, %6 : vector<8x64xf32>
    %8 = math.sin %7 : vector<8x64xf32>
    %c0_5 = arith.constant 0 : index
    %c0_6 = arith.constant 0 : index
    %9 = vector.load %arg4[%c0_5, %c0_6] : memref<8x64xf32, #tpu.memory_space<vmem>>, vector<8x64xf32>
    tpu.vector_store %arg4[%c0_5, %c0_6], %8 {strides = array<i32>} : memref<8x64xf32, #tpu.memory_space<vmem>>, vector<8x64xf32>,
    return
  }
  func.func @transform_0(%arg0: i32) -> (i32, i32) {
    %c0_i32 = arith.constant 0 : i32
    %c0_i32_0 = arith.constant 0 : i32
    return %arg0, %c0_i32 : i32, i32
  }
  func.func @transform_1(%arg0: i32) -> (i32, i32) {
    %c0_i32 = arith.constant 0 : i32
    %c0_i32_0 = arith.constant 0 : i32
    %c0_i32_1 = arith.constant 0 : i32
    return %c0_i32, %c0_i32_0 : i32, i32
  }
  func.func @transform_2(%arg0: i32) -> (i32, i32) {
    %c0_i32 = arith.constant 0 : i32
    %c0_i32_0 = arith.constant 0 : i32
    %c0_i32_1 = arith.constant 0 : i32
    return %c0_i32, %c0_i32_0 : i32, i32
  }
  func.func @transform_3(%arg0: i32) -> (i32, i32) {
    %c0_i32 = arith.constant 0 : i32
    %c0_i32_0 = arith.constant 0 : i32
    return %arg0, %c0_i32 : i32, i32
  }
}

</mosaic_0001>

<bundles_post_ra>
// kernel: tpu_custom_call.1
= control target key start
LH: loop header
LB: loop body
LE: loop exit
PB: predicated region body
PF: predicated region fallthrough
CT: control target
= control target key end

     0   :  { %v202_v1 = vmov 0   ;;  %s263_s0 = inlined_call_operand.vmem [shape: f32[8,1], index: 0, kind: input, shape index: {}]   ;;  %s264_s1 = inlined_call_operand.vmem [shape: f32[1,64], index: 1, kind: input, shape index: {}]   ;;  %s265_s2 = inlined_call_operand.vmem [shape: f32[1,64], index: 2, kind: input, shape index: {}]   ;;  %s266_s3 = inlined_call_operand.hbm [shape: f32[8,64], index: 3, kind: output, shape index: {}]  }
   0x1   :  { %v15_v0 = vld [vmem:[%s263_s0] sm:$0xff]  ;;  %175 = vset.pattern.permute.xlu0 %v202_v1 }
   0x2   :  { %19 = vperm.xlu0 %175, %v15_v0  }
   0x3   :  { %8 = vsyncpa [#allocation3], 0  ;;  %v157_v2 = vld [vmem:[%s264_s1] ss:$0 sm:$0xff]  ;;  %v203_v18 = vmov 2102212464  }
   0x4   :  { %v158_v3 = vld [vmem:[%s265_s2] ss:$0 sm:$0xff]  ;;  %v204_v20 = vmov 920167782   ;;  %v205_v24 = vmov 1326507024  }
   0x5   :  { %v206_v26 = vmov 683565275   ;;  %v207_v28 = vmov 2475754826   ;;  %v208_v31 = vmov 2131351028  }
   0x6   :  { %s209_s0 = smov [#allocation2]   ;;  %vm141_vm12 = vcmask 523264  }
   0x7   :  { %s149_s1 = sshll.u32 %s209_s0, 4  ;;  %s150_s1 = int_to_ptr.vmem [resolvable:$true] %s149_s1 }
   0x8   :  { %s180_s2 = scalar_lea.vmem %s150_s1, 128  ;;  %p185_p1 = scmp.lt.s32.totalorder %s150_s1, %s150_s1 }
   0x9   :  { %p181_p0 = scmp.ne.s32.totalorder %s150_s1, %s180_s2  ;;  %p186_p2 = scmp.lt.s32.totalorder %s180_s2, %s180_s2 }
   0xb   :  { %p187_p3 = por %p186_p2, %p185_p1 }
   0xd   :  { %p188_p4 = pnand %p187_p3, %p181_p0 }
  0x7d   :  { %v20_v4 = vpop.permute.xlu0 %19 }
  0x7e   :  { %v28_v5 = vmul.f32 %v157_v2, %v20_v4 }
  0x80   :  { %v239_v6 = vadd.f32 %v158_v3, %v28_v5 }
  0x82   :  { %v40_v7 = vand.u32 2139095040, %v239_v6  ;;  %v37_v8 = vand.u32 2147483647, %v239_v6  ;;  %vm39_vm7 = vcmp.lt.s32.totalorder %v239_v6, 0  ;;  %vm129_vm13 = vweird.f32 %v239_v6 }
  0x84   :  { %v41_v9 = vshrl.u32 %v40_v7, 23  ;;  %v44_v11 = vand.u32 8388607, %v37_v8  ;;  %vm38_vm8 = vcmp.le.f32.partialorder %v37_v8, 0.7853982 }
  0x86   :  { %v159_v10 = vadd.s32 4294967169, %v41_v9  ;;  %v45_v14 = vor.u32 8388608, %v44_v11 }
  0x88   :  { %v47_v12 = vadd.s32 1, %v159_v10  ;;  %v85_v22 = vshll.u32 %v45_v14, 8 }
  0x8a   :  { %vm48_vm0 = vcmp.gt.s32.totalorder %v47_v12, 0 }
  0x8b   :  { %v49_v13 = vsel %vm48_vm0, %v47_v12, 0 }
  0x8c   :  { %v51_v15 = vand.u32 31, %v49_v13  ;;  %v50_v16 = vshrl.u32 %v49_v13, 5 }
  0x8e   :  { %v52_v17 = vsub.s32 32, %v51_v15  ;;  %v63_v19 = vshll.u32 %v203_v18, %v51_v15  ;;  %v66_v21 = vshll.u32 %v204_v20, %v51_v15  ;;  %v54_v27 = vshll.u32 %v206_v26, %v51_v15 }
  0x8f   :  { %v57_v30 = vshll.u32 %v207_v28, %v51_v15  ;;  %v60_v33 = vshll.u32 %v208_v31, %v51_v15  ;;  %vm72_vm1 = vcmp.lt.s32.totalorder %v50_v16, 4  ;;  %vm69_vm2 = vcmp.lt.s32.totalorder %v50_v16, 1 }
  0x90   :  { %v64_v23 = vshrl.u32 %v204_v20, %v52_v17  ;;  %v67_v25 = vshrl.u32 %v205_v24, %v52_v17  ;;  %v55_v29 = vshrl.u32 %v207_v28, %v52_v17  ;;  %v58_v32 = vshrl.u32 %v208_v31, %v52_v17 }
  0x91   :  { %v61_v34 = vshrl.u32 %v203_v18, %v52_v17  ;;  %v53_v38 = vshrl.u32 %v206_v26, %v52_v17  ;;  %vm70_vm3 = vcmp.lt.s32.totalorder %v50_v16, 2  ;;  %vm71_vm4 = vcmp.lt.s32.totalorder %v50_v16, 3 }
  0x92   :  { %v65_v35 = vor.u32 %v64_v23, %v63_v19  ;;  %v68_v36 = vor.u32 %v67_v25, %v66_v21  ;;  %v56_v37 = vor.u32 %v55_v29, %v54_v27  ;;  %v59_v39 = vor.u32 %v58_v32, %v57_v30 }
  0x93   :  { %v62_v40 = vor.u32 %v61_v34, %v60_v33 }
  0x94   :  { %v78_v41 = vsel %vm72_vm1, %v65_v35, 920167782  ;;  %v82_v42 = vsel %vm72_vm1, %v68_v36, 1326507024  ;;  %v77_v44 = vsel %vm69_vm2, %v56_v37, %v59_v39  ;;  %v73_v47 = vsel %vm69_vm2, %v53_v38, %v56_v37 }
  0x95   :  { %v74_v43 = vsel %vm72_vm1, %v62_v40, 2102212464  ;;  %v79_v45 = vsel %vm71_vm4, %v62_v40, %v78_v41  ;;  %v81_v46 = vsel %vm69_vm2, %v59_v39, %v62_v40  ;;  %v83_v50 = vsel %vm71_vm4, %v65_v35, %v82_v42 }
  0x96   :  { %v75_v48 = vsel %vm71_vm4, %v59_v39, %v74_v43  ;;  %v80_v49 = vsel %vm70_vm3, %v77_v44, %v79_v45  ;;  %v84_v51 = vsel %vm70_vm3, %v81_v46, %v83_v50 }
  0x97   :  { %v245_v52 = vmul.u32.u64.low %v85_v22, %v80_v49  ;;  %v246_v53 = vmul.u32.u64.high %v85_v22, %v80_v49, %v245_v52  ;;  %v248_v54 = vmul.u32.u64.low %v85_v22, %v84_v51  ;;  %v249_v55 = vmul.u32.u64.high %v85_v22, %v84_v51, %v248_v54 }
  0x98   :  { %v76_v56 = vsel %vm70_vm3, %v73_v47, %v75_v48 }
  0x99   :  { %v95_v57 = vadd.s32 1, %v246_v53  ;;  %v92_v58 = vmul.u32 %v85_v22, %v76_v56  ;;  %vm94_vm5 = vc.u32 %v249_v55, %v245_v52  ;;  %v93_v7 = vadd.s32 %v245_v52, %v249_v55 }
  0x9b   :  { %v96_v59 = vsel %vm94_vm5, %v95_v57, %v246_v53 }
  0x9c   :  { %v97_v60 = vadd.s32 %v96_v59, %v92_v58 }
  0x9e   :  { %v98_v61 = vadd.s32 536870912, %v97_v60 }
  0xa0   :  { %v99_v62 = vshrl.u32 %v98_v61, 30 }
  0xa2   :  { %v100_v63 = vshll.u32 %v99_v62, 30  ;;  %v123_v21 = vsub.s32 4, %v99_v62 }
  0xa4   :  { %v101_v0 = vsub.s32 %v97_v60, %v100_v63  ;;  %v124_v24 = vsel %vm39_vm7, %v123_v21, %v99_v62 }
  0xa5   :  { %v126_v25 = vsel %vm38_vm8, 0, %v124_v24 }
  0xa6   :  { %v103_v1 = vsub.s32 0, %v101_v0  ;;  %v130_v26 = vadd.s32 3, %v126_v25 }
  0xa8   :  { %v160_v2 = vmin.u32 %v103_v1, %v101_v0  ;;  %v131_v27 = vand.u32 3, %v130_v26 }
  0xaa   :  { %v105_v3 = vclz %v160_v2  ;;  %vm136_vm9 = vcmp.eq.s32.totalorder %v131_v27, 2  ;;  %vm133_vm10 = vcmp.eq.s32.totalorder %v131_v27, 0  ;;  %vm132_vm11 = vcmp.lt.s32.totalorder %v131_v27, 2 }
  0xac   :  { %v161_v4 = vadd.s32 4294967294, %v105_v3 }
  0xae   :  { %vm162_vm6 = vcmp.lt.s32.totalorder %v161_v4, 0 }
  0xaf   :  { %v108_v5 = vsel %vm162_vm6, 0, %v161_v4 }
  0xb0   :  { %v109_v9 = vsub.s32 32, %v108_v5  ;;  %v113_v10 = vsub.s32 4294967266, %v108_v5  ;;  %v110_v11 = vshll.u32 %v101_v0, %v108_v5 }
  0xb2   :  { %v111_v12 = vshrl.u32 %v93_v7, %v109_v9  ;;  %v114_v13 = vadd.s32 127, %v113_v10 }
  0xb4   :  { %v112_v14 = vor.u32 %v111_v12, %v110_v11  ;;  %v115_v15 = vshll.u32 %v114_v13, 23 }
  0xb6   :  { %v116_v16 = vor.u32 4788187, %v115_v15  ;;  %v119_v18 = vcvt.s32.f32 %v112_v14 }
  0xb8   :  { %v117_v17 = vand.u32 2147483647, %v116_v16 }
  0xba   :  { %v120_v19 = vmul.f32 %v119_v18, %v117_v17 }
  0xbc   :  { %v121_v20 = vxor.u32 2147483648, %v120_v19 }
  0xbe   :  { %v122_v22 = vsel %vm39_vm7, %v121_v20, %v120_v19 }
  0xbf   :  { %v125_v23 = vsel %vm38_vm8, %v239_v6, %v122_v22 }
  0xc0   :  { %176 = vcosq.f32 %v125_v23 }
  0xc1   :  { %178 = vsinq.f32 %v125_v23 }
  0xcd   :  { %v177_v28 = vpop.eup %176 }
  0xce   :  { %v179_v29 = vpop.eup %178  ;;  %v137_v30 = vxor.u32 2147483648, %v177_v28 }
  0xcf   :  { %v134_v31 = vxor.u32 2147483648, %v179_v29 }
  0xd0   :  { %v138_v32 = vsel %vm136_vm9, %v137_v30, %v179_v29 }
  0xd1   :  { %v135_v8 = vsel %vm133_vm10, %v177_v28, %v134_v31 }
  0xd2   :  { %v139_v33 = vsel %vm132_vm11, %v135_v8, %v138_v32 }
  0xd3   :  { %v140_v34 = vsel %vm129_vm13, nan, %v139_v33 }
  0xd4   :  { %142 = vst.msk [vmem:[#allocation2] sm:$0xff] %vm141_vm12, %v140_v34 }
  0xd5   :  { %191 = shalt.err (!%p188_p4)
}
  0xd6   :  { %152 = dma.vmem_to_hbm [thread:$0]  %s150_s1, 128, %s266_s3, [#allocation3]  }
  0xd7   :  { %200 = dma.done.wait [#allocation3], 128  }
  0xd8   :  { %201 = vsyncadd [#allocation3], 4294967168 }
  0xd9   :  { %156 = vsyncpa [#allocation3], 1 }

</bundles_post_ra>
